<compile_context>
chip_gen: v6e
topology: v6e:2x2x1
jax: 0.10.0
libtpu: 0.0.40
codegen_flags: <defaults>
</compile_context>

<pallas_src>
import jax
import jax.numpy as jnp
from jax import lax
from jax.experimental import pallas as pl
from jax.experimental.pallas import tpu as pltpu


def _cdiv(a, b):
    return -(-a // b)


def _round_up(x, m):
    return _cdiv(x, m) * m


_MAX_BN = 512                            # row-block cap (sublane axis)
_MAX_TT = 2048                           # time-tile cap (lane axis)
_VMEM_INPUT_BUDGET = 24 * 1024 * 1024    # double-buffered input blocks
_STEP_OVERHEAD_BYTES = 768 * 1024        # ~0.35us grid-step overhead, in HBM-bytes


def _pick_time_tile(t):
    """Lane-axis tile: full T when small; else minimize tail over-read."""
    if t <= _MAX_TT:
        return t, 1, False                       # single full-row tile: no tail
    cands = (2048, 1024, 512, 256, 128)
    exact = [c for c in cands if t % c == 0]
    if exact:
        tt = exact[0]                            # largest exact divisor
    else:
        tt = min(cands, key=lambda c: (_cdiv(t, c) * c, -c))
    nt = _cdiv(t, tt)
    return tt, nt, nt * tt != t


def _pick_row_block(n, tt, in_bytes):
    """Sublane-axis block: as big as the VMEM budget allows, trading per-step
    overhead against last-block row over-read (garbage rows are discarded on
    output writeback, but their HBM reads are not free)."""
    if n <= 8:
        return n                                 # tiny / latency path: full batch
    n8 = _round_up(n, 8)
    vmem_cap = max(16, (_VMEM_INPUT_BUDGET // (2 * tt * in_bytes)) // 16 * 16)
    cap = min(_MAX_BN, vmem_cap, n8)
    cands = list(range(16, cap + 1, 16))
    if n8 <= cap and n8 not in cands:
        cands.append(n8)                         # exact (8-rounded) batch cover
    best, best_cost = cands[0], None
    for c in cands:
        over = (-n) % c                          # over-read rows in the last block
        cost = _cdiv(n, c) * _STEP_OVERHEAD_BYTES + over * tt * in_bytes
        if best_cost is None or cost < best_cost or (cost == best_cost and c > best):
            best, best_cost = c, cost
    return best


def _make_brl_kernel(bn, tt, nt, nt_half, t_real, has_tail):
    nfull = tt // 128
    rem = tt - nfull * 128

    def accumulate(acc_ref, bce):
        # Fold tt lanes down to the resident 128-lane accumulator with a pairwise
        # tree (short serial VALU dependency chain per output vreg).
        if nfull > 0:
            chunks = [bce[:, k * 128:(k + 1) * 128] for k in range(nfull)]
            while len(chunks) > 1:
                nxt = [chunks[i] + chunks[i + 1] for i in range(0, len(chunks) - 1, 2)]
                if len(chunks) % 2:
                    nxt.append(chunks[-1])
                chunks = nxt
            acc_ref[...] += chunks[0]
        if rem > 0:
            # Only reachable on the single-tile (tt == T, T % 128 != 0) path, so
            # this sub-128-lane store runs once per row block.
            acc_ref[:, 0:rem] = acc_ref[:, 0:rem] + bce[:, nfull * 128:tt]

    def kernel(pw_ref, pred_ref, gt_ref, mask_ref, acc_ref):
        # pw_ref:   (1,)  f32 SMEM           BCEWithLogits pos_weight (scalar channel)
        # pred_ref: (bn, tt) logits tile      widened to f32 in-VMEM
        # gt_ref:   (bn, tt) labels tile      ({0,1}; any float dtype)
        # mask_ref: (bn, tt) valid-frame mask ({0,1}; any float dtype)
        # acc_ref:  (bn, 128) f32 resident output block (lane-wise partial sums)
        j = pl.program_id(2)

        @pl.when(j == 0)
        def _init():
            acc_ref[...] = jnp.zeros_like(acc_ref)

        pw = pw_ref[0]
        m = mask_ref[...].astype(jnp.float32)
        x = pred_ref[...].astype(jnp.float32) * m          # pred * mask.unsqueeze(0)
        y = gt_ref[...].astype(jnp.float32) * m            # gt   * mask.unsqueeze(0)

        # BCEWithLogitsLoss(pos_weight=pw, reduction='none'), PyTorch-stable form:
        #   bce = (1 - y) * x + (1 + (pw - 1) * y) * (log1p(exp(-|x|)) + max(-x, 0))
        lw = (pw - 1.0) * y + 1.0
        bce = (1.0 - y) * x + lw * (jnp.log1p(jnp.exp(-jnp.abs(x))) + jnp.maximum(-x, 0.0))

        if has_tail:
            # Only the genuinely-last time tile over-reads past T; keep the
            # iota/where validity mask off the hot path via pl.when.
            jb = pl.program_id(0) * nt_half + j            # global time-tile index

            @pl.when(jb < nt - 1)
            def _body():
                accumulate(acc_ref, bce)

            @pl.when(jb == nt - 1)
            def _tail():
                col = lax.broadcasted_iota(jnp.int32, (bn, tt), 1) + (nt - 1) * tt
                accumulate(acc_ref, jnp.where(col < t_real, bce, 0.0))
        else:
            accumulate(acc_ref, bce)

    return kernel


def boundary_regression_loss(preds, gts, masks, precise_sliding_num, pos_weight,
                             eps=1e-10):
    """preds, gts: (N, 1, T); masks: (N, T); precise_sliding_num: (N,);
    pos_weight: (1,). Returns the scalar of BoundaryRegressionLoss.forward.

    gts/masks may be passed in bf16 (or any float dtype) if produced that way
    upstream; the kernel widens them in-VMEM. Masked-out frames (mask == 0)
    contribute log(2) each to the per-sample mean, exactly as in the reference."""
    n, _, t = preds.shape
    # Free (bitcast) reshapes only — no wrapper-side casts / pads / repacks.
    p2 = preds.reshape(n, t)
    g2 = gts.reshape(n, t)
    m2 = masks.reshape(n, t)

    in_bytes = p2.dtype.itemsize + g2.dtype.itemsize + m2.dtype.itemsize

    tt, nt, has_tail = _pick_time_tile(t)
    bn = _pick_row_block(n, tt, in_bytes)
    row_blocks = _cdiv(n, bn)
    # Time-half split only when the row axis gives a single parallel unit and it
    # divides the tile count evenly (keeps v7x's second TC busy on small-N inputs).
    n_half = 2 if (row_blocks == 1 and nt >= 2 and nt % 2 == 0) else 1
    nt_half = nt // n_half

    kernel = _make_brl_kernel(bn, tt, nt, nt_half, t, has_tail)

    def time_map(h, i, j):
        return (i, h * nt_half + j)

    grid = (n_half, row_blocks, nt_half)

    cost = pl.CostEstimate(
        flops=int(12 * n * t),
        transcendentals=int(2 * n * t),
        bytes_accessed=int(n * t * in_bytes + n * n_half * 128 * 4 + 4),
    )

    lane_sums = pl.pallas_call(
        kernel,
        out_shape=jax.ShapeDtypeStruct((n, n_half * 128), jnp.float32),
        grid=grid,
        in_specs=[
            pl.BlockSpec(memory_space=pltpu.MemorySpace.SMEM),   # pos_weight
            pl.BlockSpec((bn, tt), time_map),                    # preds
            pl.BlockSpec((bn, tt), time_map),                    # gts
            pl.BlockSpec((bn, tt), time_map),                    # masks
        ],
        out_specs=pl.BlockSpec((bn, 128), lambda h, i, j: (i, h)),  # resident lane sums
        compiler_params=pltpu.CompilerParams(
            dimension_semantics=("parallel", "parallel", "arbitrary"),
            vmem_limit_bytes=40 * 1024 * 1024,   # blocks are sized to ~24 MiB dbuf
        ),
        cost_estimate=cost,
    )(jnp.asarray(pos_weight, jnp.float32).reshape(-1), p2, g2, m2)

    # Reference semantics:
    #   loss = (1/N) * sum_i [ mean_j( mean_t(bce_i) / (psn_j + eps) ) ]
    #        = (1/N) * sum_i mean_t(bce_i) * mean_j( 1 / (psn_j + eps) )
    per_sample_mean = lane_sums.sum(axis=1) / jnp.float32(t)                    # (N,)
    inv_mean = jnp.mean(1.0 / (precise_sliding_num.astype(jnp.float32) + eps))  # scalar
    return jnp.sum(per_sample_mean) * inv_mean / jnp.float32(n)


def _reference(preds, gts, masks, psn, pos_weight, eps=1e-10):
    """Pure-JAX transcription of BoundaryRegressionLoss.forward for verification."""
    n, _, t = preds.shape
    pw = jnp.asarray(pos_weight, jnp.float32).reshape(-1)[0]
    p = preds.reshape(n, t).astype(jnp.float32)
    g = gts.reshape(n, t).astype(jnp.float32)
    m = masks.reshape(n, t).astype(jnp.float32)
    psn = psn.astype(jnp.float32)
    loss = jnp.float32(0.0)
    for i in range(n):
        x = p[i] * m[i]
        y = g[i] * m[i]
        lw = (pw - 1.0) * y + 1.0
        bce = (1.0 - y) * x + lw * (jnp.log1p(jnp.exp(-jnp.abs(x))) + jnp.maximum(-x, 0.0))
        loss = loss + jnp.mean(jnp.mean(bce) / (psn + eps))
    return loss / n


if __name__ == "__main__":
    key = jax.random.PRNGKey(0)

    def make_inputs(k, n, t, label_dtype):
        k1, k2, k3, k4 = jax.random.split(k, 4)
        preds = jax.random.normal(k1, (n, 1, t), dtype=jnp.float32)               # logits
        gts = (jax.random.uniform(k2, (n, 1, t)) < 0.1).astype(label_dtype)       # boundary gt
        masks = (jax.random.uniform(k3, (n, t)) < 0.9).astype(label_dtype)        # valid mask
        psn = jnp.floor(jax.random.uniform(k4, (n,), minval=1.0, maxval=4.0)).astype(jnp.float32)
        return preds, gts, masks, psn

    pos_weight = jnp.array([2.0], dtype=jnp.float32)   # deterministic module "parameter"

    cases = [
        (2, 256, jnp.float32),     # tiny single-tile path (grid 1x1x1)
        (16, 2200, jnp.bfloat16),  # multi-tile reduction + last-tile tail mask + bf16 labels
        (4, 4096, jnp.float32),    # small-N big-T: time-half split across parallel grid units
    ]
    case_keys = jax.random.split(key, len(cases))
    for ck, (n, t, ldt) in zip(case_keys, cases):
        preds, gts, masks, psn = make_inputs(ck, n, t, ldt)
        loss = jax.block_until_ready(
            boundary_regression_loss(preds, gts, masks, psn, pos_weight))
        ref = _reference(preds, gts, masks, psn, pos_weight)
        assert jnp.allclose(loss, ref, rtol=1e-4, atol=1e-6), (n, t, float(loss), float(ref))

    print("KERNEL_OK")
</pallas_src>

<mosaic_0001>
module attributes {stable_mosaic.version = 11 : i64} {
  func.func @kernel(%arg0: i32, %arg1: i32, %arg2: i32, %arg3: memref<1xf32, #tpu.memory_space<smem>>, %arg4: memref<2x256xf32, #tpu.memory_space<vmem>>, %arg5: memref<2x256xf32, #tpu.memory_space<vmem>>, %arg6: memref<2x256xf32, #tpu.memory_space<vmem>>, %arg7: memref<2x128xf32, #tpu.memory_space<vmem>>) attributes {dimension_semantics = [#tpu.dimension_semantics<parallel>, #tpu.dimension_semantics<parallel>, #tpu.dimension_semantics<arbitrary>], iteration_bounds = array<i64: 1, 1, 1>, scalar_prefetch = 0 : i64, scratch_operands = 0 : i64, tpu.core_type = #tpu.core_type<tc>, window_params = [{transform_indices = @transform_0, window_bounds = array<i64: 1>}, {transform_indices = @transform_1, window_bounds = array<i64: 2, 256>}, {transform_indices = @transform_2, window_bounds = array<i64: 2, 256>}, {transform_indices = @transform_3, window_bounds = array<i64: 2, 256>}, {transform_indices = @transform_4, window_bounds = array<i64: 2, 128>}]} {
    %c0_i32 = arith.constant 0 : i32
    %0 = arith.cmpi eq, %arg2, %c0_i32 : i32
    %1 = arith.extui %0 : i1 to i32
    %c0_i32_0 = arith.constant 0 : i32
    %2 = arith.cmpi ne, %1, %c0_i32_0 : i32
    scf.if %2 {
      %cst_16 = arith.constant 0.000000e+00 : f32
      %35 = vector.broadcast %cst_16 : f32 to vector<2x128xf32>
      %c0_17 = arith.constant 0 : index
      %c0_18 = arith.constant 0 : index
      %36 = vector.load %arg7[%c0_17, %c0_18] : memref<2x128xf32, #tpu.memory_space<vmem>>, vector<2x128xf32>
      tpu.vector_store %arg7[%c0_17, %c0_18], %35 {strides = array<i32>} : memref<2x128xf32, #tpu.memory_space<vmem>>, vector<2x128xf32>,
    } else {
    }
    %c0 = arith.constant 0 : index
    %3 = memref.load %arg3[%c0] : memref<1xf32, #tpu.memory_space<smem>>
    %c0_1 = arith.constant 0 : index
    %c0_2 = arith.constant 0 : index
    %4 = vector.load %arg6[%c0_1, %c0_2] : memref<2x256xf32, #tpu.memory_space<vmem>>, vector<2x256xf32>
    %c0_3 = arith.constant 0 : index
    %c0_4 = arith.constant 0 : index
    %5 = vector.load %arg4[%c0_3, %c0_4] : memref<2x256xf32, #tpu.memory_space<vmem>>, vector<2x256xf32>
    %6 = arith.mulf %5, %4 : vector<2x256xf32>
    %c0_5 = arith.constant 0 : index
    %c0_6 = arith.constant 0 : index
    %7 = vector.load %arg5[%c0_5, %c0_6] : memref<2x256xf32, #tpu.memory_space<vmem>>, vector<2x256xf32>
    %8 = arith.mulf %7, %4 : vector<2x256xf32>
    %cst = arith.constant 1.000000e+00 : f32
    %9 = arith.subf %3, %cst : f32
    %10 = vector.broadcast %9 : f32 to vector<2x256xf32>
    %11 = arith.mulf %10, %8 : vector<2x256xf32>
    %cst_7 = arith.constant 1.000000e+00 : f32
    %12 = vector.broadcast %cst_7 : f32 to vector<2x256xf32>
    %13 = arith.addf %11, %12 : vector<2x256xf32>
    %cst_8 = arith.constant 1.000000e+00 : f32
    %14 = vector.broadcast %cst_8 : f32 to vector<2x256xf32>
    %15 = arith.subf %14, %8 : vector<2x256xf32>
    %16 = arith.mulf %15, %6 : vector<2x256xf32>
    %17 = math.absf %6 : vector<2x256xf32>
    %cst_9 = arith.constant 0.000000e+00 : f32
    %18 = vector.broadcast %cst_9 : f32 to vector<2x256xf32>
    %19 = arith.subf %18, %17 : vector<2x256xf32>
    %20 = math.exp %19 : vector<2x256xf32>
    %21 = math.log1p %20 : vector<2x256xf32>
    %cst_10 = arith.constant 0.000000e+00 : f32
    %22 = vector.broadcast %cst_10 : f32 to vector<2x256xf32>
    %23 = arith.subf %22, %6 : vector<2x256xf32>
    %cst_11 = arith.constant 0.000000e+00 : f32
    %24 = vector.broadcast %cst_11 : f32 to vector<2x256xf32>
    %25 = arith.maximumf %23, %24 : vector<2x256xf32>
    %26 = arith.addf %21, %25 : vector<2x256xf32>
    %27 = arith.mulf %13, %26 : vector<2x256xf32>
    %28 = arith.addf %16, %27 : vector<2x256xf32>
    %29 = vector.extract_strided_slice %28 {offsets = [0, 0], sizes = [2, 128], strides = [1, 1]} : vector<2x256xf32> to vector<2x128xf32>
    %30 = vector.extract_strided_slice %28 {offsets = [0, 128], sizes = [2, 128], strides = [1, 1]} : vector<2x256xf32> to vector<2x128xf32>
    %31 = arith.addf %29, %30 : vector<2x128xf32>
    %c0_12 = arith.constant 0 : index
    %c0_13 = arith.constant 0 : index
    %32 = vector.load %arg7[%c0_12, %c0_13] : memref<2x128xf32, #tpu.memory_space<vmem>>, vector<2x128xf32>
    %33 = arith.addf %32, %31 : vector<2x128xf32>
    %c0_14 = arith.constant 0 : index
    %c0_15 = arith.constant 0 : index
    %34 = vector.load %arg7[%c0_14, %c0_15] : memref<2x128xf32, #tpu.memory_space<vmem>>, vector<2x128xf32>
    tpu.vector_store %arg7[%c0_14, %c0_15], %33 {strides = array<i32>} : memref<2x128xf32, #tpu.memory_space<vmem>>, vector<2x128xf32>,
    return
  }
  func.func @transform_0(%arg0: i32, %arg1: i32, %arg2: i32) -> i32 {
    %c0_i32 = arith.constant 0 : i32
    %c0_i32_0 = arith.constant 0 : i32
    return %c0_i32 : i32
  }
  func.func @transform_1(%arg0: i32, %arg1: i32, %arg2: i32) -> (i32, i32) {
    %c1_i32 = arith.constant 1 : i32
    %0 = arith.muli %arg0, %c1_i32 : i32
    %1 = arith.addi %0, %arg2 : i32
    %c0_i32 = arith.constant 0 : i32
    return %arg1, %1 : i32, i32
  }
  func.func @transform_2(%arg0: i32, %arg1: i32, %arg2: i32) -> (i32, i32) {
    %c1_i32 = arith.constant 1 : i32
    %0 = arith.muli %arg0, %c1_i32 : i32
    %1 = arith.addi %0, %arg2 : i32
    %c0_i32 = arith.constant 0 : i32
    return %arg1, %1 : i32, i32
  }
  func.func @transform_3(%arg0: i32, %arg1: i32, %arg2: i32) -> (i32, i32) {
    %c1_i32 = arith.constant 1 : i32
    %0 = arith.muli %arg0, %c1_i32 : i32
    %1 = arith.addi %0, %arg2 : i32
    %c0_i32 = arith.constant 0 : i32
    return %arg1, %1 : i32, i32
  }
  func.func @transform_4(%arg0: i32, %arg1: i32, %arg2: i32) -> (i32, i32) {
    %c0_i32 = arith.constant 0 : i32
    return %arg1, %arg0 : i32, i32
  }
}

</mosaic_0001>

<bundles_post_ra>
// kernel: tpu_custom_call.1
= control target key start
LH: loop header
LB: loop body
LE: loop exit
PB: predicated region body
PF: predicated region fallthrough
CT: control target
= control target key end

     0   :  { %10 = vsyncpa [#allocation4], 0  ;;  %s260_s0 = inlined_call_operand.<no memory space> [shape: f32[1], index: 0, kind: input, shape index: {}]   ;;  %s261_s1 = inlined_call_operand.hbm [shape: f32[2,256], index: 1, kind: input, shape index: {}]   ;;  %s262_s2 = inlined_call_operand.hbm [shape: f32[2,256], index: 2, kind: input, shape index: {}]   ;;  %s263_s3 = inlined_call_operand.vmem [shape: f32[2,256], index: 3, kind: input, shape index: {}]   ;;  %s264_s4 = inlined_call_operand.hbm [shape: f32[2,128], index: 4, kind: output, shape index: {}]  }
   0x1   :  { %11 = vsyncpa [#allocation7], 0 }
   0x2   :  { %12 = vsyncpa [#allocation5], 0  ;;  %s216_s15 = smov [#allocation3]   ;;  %s217_s17 = smov [#allocation6]  }
   0x3   :  { %s25_s16 = sshll.u32 %s216_s15, 4  ;;  %s39_s18 = sshll.u32 %s217_s17, 4  ;;  %s26_s16 = int_to_ptr.vmem [resolvable:$true] %s25_s16  ;;  %s40_s18 = int_to_ptr.vmem [resolvable:$true] %s39_s18 }
   0x4   :  { %s158_s19 = scalar_lea.vmem %s26_s16, 64  ;;  %p163_p1 = scmp.lt.s32.totalorder %s26_s16, %s26_s16 }
   0x5   :  { %p159_p0 = scmp.ne.s32.totalorder %s26_s16, %s158_s19  ;;  %p164_p2 = scmp.lt.s32.totalorder %s158_s19, %s158_s19 }
   0x7   :  { %p165_p3 = por %p164_p2, %p163_p1 }
   0x9   :  { %p166_p4 = pnand %p165_p3, %p159_p0 }
   0xb   :  { %169 = shalt.err (!%p166_p4)
}
   0xc   :  { %28 = dma.hbm_to_vmem [thread:$0]  %s261_s1, 64, %s26_s16, [#allocation4]  }
   0xd   :  { %s178_s22 = scalar_lea.vmem %s40_s18, 64  ;;  %p183_p6 = scmp.lt.s32.totalorder %s40_s18, %s40_s18 }
   0xe   :  { %p179_p5 = scmp.ne.s32.totalorder %s40_s18, %s178_s22  ;;  %p184_p7 = scmp.lt.s32.totalorder %s178_s22, %s178_s22 }
  0x10   :  { %p185_p8 = por %p184_p7, %p183_p6 }
  0x12   :  { %p186_p9 = pnand %p185_p8, %p179_p5 }
  0x14   :  { %189 = shalt.err (!%p186_p9)
}
  0x15   :  { %42 = dma.hbm_to_vmem [thread:$0]  %s262_s2, 64, %s40_s18, [#allocation7]  }
  0x16   :  { %210 = dma.done.wait [#allocation4], 64  }
  0x17   :  { %211 = vsyncadd [#allocation4], 4294967232 }
  0x18   :  { %212 = dma.done.wait [#allocation7], 64  }
  0x19   :  { %213 = vsyncadd [#allocation7], 4294967232  ;;  %v218_v0 = vmov 0.0   ;;  %v83_v1 = vld [vmem:[%s263_s3] sm:$0xf]  ;;  %s141_s27 = sadd.f32 -1.0, %s260_s0 }
  0x1a   :  { %81 = vst [vmem:[#allocation8] sm:$0x3] %v218_v0  ;;  %v84_v2 = vld [vmem:[#allocation3] sm:$0xf]  ;;  %v86_v9 = vld [vmem:[#allocation6] sm:$0xf] }
  0x1b   :  { %v85_v3 = vmul.f32 %v84_v2, %v83_v1  ;;  %v87_v11 = vmul.f32 %v86_v9, %v83_v1  ;;  %v89_v12 = vstv %s141_s27  ;;  %s219_s0 = smov [#allocation8]  }
  0x1c   :  { %s125_s3 = sshll.u32 %s219_s0, 4  ;;  %s126_s3 = int_to_ptr.vmem [resolvable:$true] %s125_s3 }
  0x1d   :  { %v94_v4 = vand.u32 2147483647, %v85_v3  ;;  %v107_v15 = vsub.f32 0.0, %v85_v3  ;;  %v90_v16 = vmul.f32 %v89_v12, %v87_v11  ;;  %v92_v19 = vsub.f32 1.0, %v87_v11  ;;  %s190_s28 = scalar_lea.vmem %s126_s3, 32  ;;  %p195_p11 = scmp.lt.s32.totalorder %s126_s3, %s126_s3 }
  0x1e   :  { %p191_p10 = scmp.ne.s32.totalorder %s126_s3, %s190_s28  ;;  %p196_p12 = scmp.lt.s32.totalorder %s190_s28, %s190_s28 }
  0x1f   :  { %v95_v5 = vsub.f32 0.0, %v94_v4  ;;  %v108_v20 = vmax.f32 %v107_v15, 0.0  ;;  %v91_v22 = vadd.f32 1.0, %v90_v16  ;;  %v93_v24 = vmul.f32 %v92_v19, %v85_v3 }
  0x20   :  { %p197_p13 = por %p196_p12, %p195_p11 }
  0x21   :  { %v96_v6 = vmul.f32 1.442695, %v95_v5  ;;  %v116_v29 = vld [vmem:[#allocation8] sm:$0x3] }
  0x22   :  { %p198_p0 = pnand %p197_p13, %p191_p10 }
  0x23   :  { %146 = vpow2.f32 %v96_v6 }
  0x30   :  { %v147_v7 = vpop.eup %146 }
  0x31   :  { %v98_v8 = vadd.f32 1.0, %v147_v7  ;;  %v101_v10 = vmul.f32 -0.5, %v147_v7  ;;  %v104_v14 = vand.u32 2147483647, %v147_v7 }
  0x33   :  { %148 = vlog2.f32 %v98_v8  ;;  %v102_v13 = vadd.f32 1.0, %v101_v10  ;;  %vm105_vm0 = vcmp.lt.f32.partialorder %v104_v14, 0.0004427343 }
  0x35   :  { %v103_v17 = vmul.f32 %v147_v7, %v102_v13 }
  0x40   :  { %v149_v18 = vpop.eup %148 }
  0x41   :  { %v100_v21 = vmul.f32 0.6931472, %v149_v18 }
  0x43   :  { %v106_v23 = vsel %vm105_vm0, %v103_v17, %v100_v21 }
  0x44   :  { %v109_v25 = vadd.f32 %v108_v20, %v106_v23 }
  0x46   :  { %v110_v26 = vmul.f32 %v109_v25, %v91_v22 }
  0x48   :  { %v111_v27 = vadd.f32 %v110_v26, %v93_v24 }
  0x4a   :  { %v113_v28 = vrot.slane %v111_v27, 2 }
  0x4c   :  { %v115_v30 = vadd.f32 %v113_v28, %v111_v27 }
  0x4e   :  { %v117_v31 = vadd.f32 %v116_v29, %v115_v30 }
  0x50   :  { %118 = vst [vmem:[#allocation8] sm:$0x3] %v117_v31 }
  0x51   :  { %201 = shalt.err (!%p198_p0)
}
  0x52   :  { %128 = dma.vmem_to_hbm [thread:$0]  %s126_s3, 32, %s264_s4, [#allocation5]  }
  0x53   :  { %214 = dma.done.wait [#allocation5], 32  }
  0x54   :  { %215 = vsyncadd [#allocation5], 4294967264 }
  0x55   :  { %132 = vsyncpa [#allocation4], 1 }
  0x56   :  { %133 = vsyncpa [#allocation7], 1 }
  0x57   :  { %134 = vsyncpa [#allocation5], 1 }

</bundles_post_ra>
